<compile_context>
chip_gen: v6e
topology: v6e:2x2x1
jax: 0.10.0
libtpu: 0.0.40
codegen_flags: <defaults>
</compile_context>

<pallas_src>
import functools
import math

import jax
import jax.numpy as jnp
import numpy as np
from jax import lax
from jax.experimental import pallas as pl
from jax.experimental.pallas import tpu as pltpu


# ----------------------------- kernel helpers ------------------------------

def _hardswish(x):
    # x * relu6(x + 3) / 6   (matches torch.nn.Hardswish)
    return x * jnp.clip(x + 3.0, 0.0, 6.0) * (1.0 / 6.0)


# ------------------------------ fused C3 kernel -----------------------------

def _c3_kernel(x_ref, w12_ref, b12_ref, wm1_ref, bm1_ref, wm2_ref, bm2_ref,
               w3a_ref, w3b_ref, b3_ref, o_ref, *, H, W, c_, n_rep):
    """One grid step == one image; all intermediates stay in VMEM/vregs.

    Channel-major layout: activations are (C, H*W) with H*W on lanes.

    x_ref:   (1, C1, HW)      channel-major input (free reshape of NCHW)
    w12_ref: (2*c_, C1)       cv1|cv2 weights merged along Cout
    b12_ref: (2*c_, 1)
    wm1_ref: (n, c_, c_)      bottleneck 1x1 weights
    bm1_ref: (n, c_, 1)
    wm2_ref: (n, c_, 9*c_)    bottleneck 3x3 weights, im2col (tap-major) layout
    bm2_ref: (n, c_, 1)
    w3a_ref: (C2, c_)         cv3 weight, m-branch half
    w3b_ref: (C2, c_)         cv3 weight, y2-branch half
    b3_ref:  (C2, 1)
    o_ref:   (1, C2, HW)      channel-major output (lane-dense store)
    """
    HW = H * W
    f32 = jnp.float32

    # --- cv1 + cv2 fused into one channel-major matmul -----------------------
    x = x_ref[0]                                               # (C1, HW)
    y12 = jnp.dot(w12_ref[...], x, preferred_element_type=f32)
    y12 = _hardswish(y12 + b12_ref[...])                       # (2c_, HW)
    y1 = y12[:c_]                                              # cv1 branch
    y2 = y12[c_:]                                              # cv2 branch

    # Column border masks for the 3x3 taps (computed once).  Row out-of-range
    # pixels are zero-filled by the flat shift itself.
    col = lax.broadcasted_iota(jnp.int32, (1, HW), 1) % W
    not_first_col = col >= 1
    not_last_col = col <= W - 2

    def tap(t, dy, dx):
        """tap[:, h*W+w] = t[:, (h+dy)*W + (w+dx)], zero outside the image."""
        off = dy * W + dx
        if off > 0:
            s = jnp.concatenate(
                [t[:, off:], jnp.zeros((t.shape[0], off), t.dtype)], axis=1)
        elif off < 0:
            s = jnp.concatenate(
                [jnp.zeros((t.shape[0], -off), t.dtype), t[:, :off]], axis=1)
        else:
            s = t
        if dx == -1:
            s = jnp.where(not_first_col, s, 0.0)
        elif dx == 1:
            s = jnp.where(not_last_col, s, 0.0)
        return s

    # --- n x Bottleneck(c_, c_, shortcut=True, k=((1,1),(3,3)), e=1.0) -------
    # TODO(synk): for n_rep > ~2, replace this static unroll with lax.fori_loop
    # (dynamic wm1_ref[i]/wm2_ref[i] indexing) to bound vreg live ranges.
    m = y1
    for i in range(n_rep):
        # 1x1 conv + BN + hardswish (weight on the left, channel-major)
        t = jnp.dot(wm1_ref[i], m, preferred_element_type=f32)
        t = _hardswish(t + bm1_ref[i])                         # (c_, HW)

        # 3x3 "same" conv as one K=9*c_ matmul on an im2col tile built from
        # flat lane shifts + border masks (no padded scratch, no relayouts).
        col9 = jnp.concatenate(
            [tap(t, ky - 1, kx - 1) for ky in range(3) for kx in range(3)],
            axis=0)                                            # (9*c_, HW)
        y = jnp.dot(wm2_ref[i], col9, preferred_element_type=f32)
        m = m + _hardswish(y + bm2_ref[i])                     # residual add

    # --- cv3 on [m, y2] without materializing the concat ---------------------
    out = jnp.dot(w3a_ref[...], m, preferred_element_type=f32)
    out = out + jnp.dot(w3b_ref[...], y2, preferred_element_type=f32)
    out = _hardswish(out + b3_ref[...])                        # (C2, HW)
    o_ref[0] = out.astype(o_ref.dtype)


def c3_forward(x_nchw, packed):
    """x_nchw: (N, C1, H, W) -> (N, C2, H, W), one fused Pallas kernel."""
    N, C1, H, W = x_nchw.shape
    C2, c_ = packed["w3a"].shape
    n_rep = packed["wm1"].shape[0]
    HW = H * W

    # Channel-major input: a free reshape (no transpose through HBM).
    xf = x_nchw.reshape(N, C1, HW)

    kernel = functools.partial(_c3_kernel, H=H, W=W, c_=c_, n_rep=n_rep)
    # TODO(synk): for production feature maps, tile the grid over H row bands
    # (1-row halo) and mark that axis parallel too so v7x's 2 TensorCores stay
    # busy when N is small and the per-step block stays under 64 MiB VMEM.
    out = pl.pallas_call(
        kernel,
        out_shape=jax.ShapeDtypeStruct((N, C2, HW), x_nchw.dtype),
        grid=(N,),
        in_specs=[
            pl.BlockSpec((1, C1, HW), lambda b: (b, 0, 0)),            # x
            pl.BlockSpec((2 * c_, C1), lambda b: (0, 0)),              # w12
            pl.BlockSpec((2 * c_, 1), lambda b: (0, 0)),               # b12
            pl.BlockSpec((n_rep, c_, c_), lambda b: (0, 0, 0)),        # wm1
            pl.BlockSpec((n_rep, c_, 1), lambda b: (0, 0, 0)),         # bm1
            pl.BlockSpec((n_rep, c_, 9 * c_), lambda b: (0, 0, 0)),    # wm2
            pl.BlockSpec((n_rep, c_, 1), lambda b: (0, 0, 0)),         # bm2
            pl.BlockSpec((C2, c_), lambda b: (0, 0)),                  # w3a
            pl.BlockSpec((C2, c_), lambda b: (0, 0)),                  # w3b
            pl.BlockSpec((C2, 1), lambda b: (0, 0)),                   # b3
        ],
        out_specs=pl.BlockSpec((1, C2, HW), lambda b: (b, 0, 0)),
        compiler_params=pltpu.CompilerParams(
            dimension_semantics=("parallel",),
            vmem_limit_bytes=32 * 1024 * 1024),
    )(xf, packed["w12"], packed["b12"], packed["wm1"], packed["bm1"],
      packed["wm2"], packed["bm2"], packed["w3a"], packed["w3b"],
      packed["b3"])
    return out.reshape(N, C2, H, W)


# ----------------------- parameter init / BN folding -----------------------

_BN_EPS = 1e-5


def _init_conv(key, c_in, c_out, k):
    """Deterministic Conv2d(bias=False)+BN params, BN folded into (w, b).

    Returns channel-major weights:
      k == 1: w (c_out, c_in)
      k == 3: w (3, 3, c_out, c_in)   (ky, kx, out, in)
    and bias b (c_out, 1).
    """
    k1, k2, k3, k4, k5 = jax.random.split(key, 5)
    fan_in = c_in * k * k
    w = jax.random.normal(k1, (c_out, c_in, k, k), jnp.float32) / math.sqrt(fan_in)
    gamma = 1.0 + 0.1 * jax.random.normal(k2, (c_out,), jnp.float32)
    beta = 0.1 * jax.random.normal(k3, (c_out,), jnp.float32)
    mean = 0.1 * jax.random.normal(k4, (c_out,), jnp.float32)
    var = jnp.abs(jax.random.normal(k5, (c_out,), jnp.float32)) + 0.5
    scale = gamma / jnp.sqrt(var + _BN_EPS)
    w_fold = w * scale[:, None, None, None]
    b_fold = (beta - mean * scale).reshape(c_out, 1)
    if k == 1:
        w_mat = w_fold[:, :, 0, 0]                          # (c_out, c_in)
    else:
        w_mat = jnp.transpose(w_fold, (2, 3, 0, 1))         # (k, k, c_out, c_in)
    return {"w": w_mat, "b": b_fold}


def init_c3_params(key, c1, c2, n=1, e=0.5):
    c_ = int(c2 * e)
    keys = jax.random.split(key, 3 + 2 * n)
    params = {
        "cv1": _init_conv(keys[0], c1, c_, 1),
        "cv2": _init_conv(keys[1], c1, c_, 1),
        "cv3": _init_conv(keys[2], 2 * c_, c2, 1),
        "m": [],
    }
    for i in range(n):
        # Bottleneck(c_, c_, k=((1,1),(3,3)), e=1.0) -> inner width == c_
        params["m"].append({
            "cv1": _init_conv(keys[3 + 2 * i], c_, c_, 1),
            "cv2": _init_conv(keys[4 + 2 * i], c_, c_, 3),
        })
    return params


def pack_c3_params(params):
    """Repack raw per-conv params into the fused-kernel operand layout."""
    c_ = params["cv1"]["w"].shape[0]
    w12 = jnp.concatenate([params["cv1"]["w"], params["cv2"]["w"]], axis=0)
    b12 = jnp.concatenate([params["cv1"]["b"], params["cv2"]["b"]], axis=0)
    wm1 = jnp.stack([blk["cv1"]["w"] for blk in params["m"]])     # (n, c_, c_)
    bm1 = jnp.stack([blk["cv1"]["b"] for blk in params["m"]])     # (n, c_, 1)
    # (ky,kx,o,i) -> (o, ky, kx, i) -> (o, 9*i): tap-major columns matching the
    # kernel's im2col stacking order (ky, kx).
    wm2 = jnp.stack([
        jnp.transpose(blk["cv2"]["w"], (2, 0, 1, 3)).reshape(c_, 9 * c_)
        for blk in params["m"]])                                  # (n, c_, 9c_)
    bm2 = jnp.stack([blk["cv2"]["b"] for blk in params["m"]])     # (n, c_, 1)
    w3 = params["cv3"]["w"]                                       # (C2, 2c_)
    return {
        "w12": w12, "b12": b12,
        "wm1": wm1, "bm1": bm1, "wm2": wm2, "bm2": bm2,
        "w3a": w3[:, :c_],          # (C2, c_)  m-branch
        "w3b": w3[:, c_:],          # (C2, c_)  y2-branch
        "b3": params["cv3"]["b"],   # (C2, 1)
    }


# ---------------------------- pure-JAX reference ----------------------------

def _ref_conv1x1(x, w, b):
    # x: NHWC, w: (c_out, c_in), b: (c_out, 1)
    return _hardswish(jnp.einsum("nhwc,oc->nhwo", x, w) + b.reshape(1, 1, 1, -1))


def _ref_conv3x3(x, w, b, res):
    # w: (3, 3, c_out, c_in) -> HWIO
    w_hwio = jnp.transpose(w, (0, 1, 3, 2))
    y = lax.conv_general_dilated(
        x, w_hwio, window_strides=(1, 1), padding="SAME",
        dimension_numbers=("NHWC", "HWIO", "NHWC"))
    return res + _hardswish(y + b.reshape(1, 1, 1, -1))


def c3_reference(x_nchw, params):
    x = jnp.transpose(x_nchw, (0, 2, 3, 1))
    y1 = _ref_conv1x1(x, params["cv1"]["w"], params["cv1"]["b"])
    y2 = _ref_conv1x1(x, params["cv2"]["w"], params["cv2"]["b"])
    m = y1
    for layer in params["m"]:
        t = _ref_conv1x1(m, layer["cv1"]["w"], layer["cv1"]["b"])
        m = _ref_conv3x3(t, layer["cv2"]["w"], layer["cv2"]["b"], m)
    cat = jnp.concatenate([m, y2], axis=-1)
    out = _ref_conv1x1(cat, params["cv3"]["w"], params["cv3"]["b"])
    return jnp.transpose(out, (0, 3, 1, 2))


# ----------------------------------- main -----------------------------------

if __name__ == "__main__":
    key = jax.random.PRNGKey(0)
    kx, kp = jax.random.split(key)

    N, C1, H, W = 2, 16, 16, 16          # small NCHW input
    C2, n_blocks, expansion = 16, 1, 0.5

    x = jax.random.normal(kx, (N, C1, H, W), jnp.float32)
    params = init_c3_params(kp, C1, C2, n=n_blocks, e=expansion)
    packed = pack_c3_params(params)

    fwd = jax.jit(c3_forward)
    out = jax.block_until_ready(fwd(x, packed))

    ref = jax.block_until_ready(c3_reference(x, params))
    assert out.shape == (N, C2, H, W), out.shape
    np.testing.assert_allclose(np.asarray(out), np.asarray(ref),
                               rtol=1e-4, atol=1e-4)

    print("KERNEL_OK")
</pallas_src>

<mosaic_0001>
module attributes {stable_mosaic.version = 11 : i64} {
  func.func @_c3_kernel(%arg0: i32, %arg1: memref<1x16x256xf32, #tpu.memory_space<vmem>>, %arg2: memref<16x16xf32, #tpu.memory_space<vmem>>, %arg3: memref<16x1xf32, #tpu.memory_space<vmem>>, %arg4: memref<1x8x8xf32, #tpu.memory_space<vmem>>, %arg5: memref<1x8x1xf32, #tpu.memory_space<vmem>>, %arg6: memref<1x8x72xf32, #tpu.memory_space<vmem>>, %arg7: memref<1x8x1xf32, #tpu.memory_space<vmem>>, %arg8: memref<16x8xf32, #tpu.memory_space<vmem>>, %arg9: memref<16x8xf32, #tpu.memory_space<vmem>>, %arg10: memref<16x1xf32, #tpu.memory_space<vmem>>, %arg11: memref<1x16x256xf32, #tpu.memory_space<vmem>>) attributes {dimension_semantics = [#tpu.dimension_semantics<parallel>], iteration_bounds = array<i64: 2>, scalar_prefetch = 0 : i64, scratch_operands = 0 : i64, tpu.core_type = #tpu.core_type<tc>, window_params = [{transform_indices = @transform_0, window_bounds = array<i64: 1, 16, 256>}, {pipeline_mode = #tpu.pipeline_mode<synchronous>, transform_indices = @transform_1, window_bounds = array<i64: 16, 16>}, {pipeline_mode = #tpu.pipeline_mode<synchronous>, transform_indices = @transform_2, window_bounds = array<i64: 16, 1>}, {pipeline_mode = #tpu.pipeline_mode<synchronous>, transform_indices = @transform_3, window_bounds = array<i64: 1, 8, 8>}, {pipeline_mode = #tpu.pipeline_mode<synchronous>, transform_indices = @transform_4, window_bounds = array<i64: 1, 8, 1>}, {pipeline_mode = #tpu.pipeline_mode<synchronous>, transform_indices = @transform_5, window_bounds = array<i64: 1, 8, 72>}, {pipeline_mode = #tpu.pipeline_mode<synchronous>, transform_indices = @transform_6, window_bounds = array<i64: 1, 8, 1>}, {pipeline_mode = #tpu.pipeline_mode<synchronous>, transform_indices = @transform_7, window_bounds = array<i64: 16, 8>}, {pipeline_mode = #tpu.pipeline_mode<synchronous>, transform_indices = @transform_8, window_bounds = array<i64: 16, 8>}, {pipeline_mode = #tpu.pipeline_mode<synchronous>, transform_indices = @transform_9, window_bounds = array<i64: 16, 1>}, {transform_indices = @transform_10, window_bounds = array<i64: 1, 16, 256>}]} {
    %c0 = arith.constant 0 : index
    %c0_0 = arith.constant 0 : index
    %c0_1 = arith.constant 0 : index
    %0 = vector.load %arg1[%c0, %c0_0, %c0_1] : memref<1x16x256xf32, #tpu.memory_space<vmem>>, vector<1x16x256xf32>
    %1 = vector.shape_cast %0 : vector<1x16x256xf32> to vector<16x256xf32>
    %c0_2 = arith.constant 0 : index
    %c0_3 = arith.constant 0 : index
    %2 = vector.load %arg2[%c0_2, %c0_3] : memref<16x16xf32, #tpu.memory_space<vmem>>, vector<16x16xf32>
    %cst = arith.constant dense<0.000000e+00> : vector<16x256xf32>
    %3 = tpu.matmul %2, %1, %cst {dimension_numbers = #tpu.dot_dimension_numbers<[1], [0], [0], [1], [0, 0, 1, 1], [], []>} : vector<16x16xf32>, vector<16x256xf32>, vector<16x256xf32> -> vector<16x256xf32>
    %c0_4 = arith.constant 0 : index
    %c0_5 = arith.constant 0 : index
    %4 = vector.load %arg3[%c0_4, %c0_5] : memref<16x1xf32, #tpu.memory_space<vmem>>, vector<16x1xf32>
    %5 = vector.broadcast %4 : vector<16x1xf32> to vector<16x256xf32>
    %6 = arith.addf %3, %5 : vector<16x256xf32>
    %cst_6 = arith.constant 3.000000e+00 : f32
    %7 = vector.broadcast %cst_6 : f32 to vector<16x256xf32>
    %8 = arith.addf %6, %7 : vector<16x256xf32>
    %cst_7 = arith.constant 0.000000e+00 : f32
    %cst_8 = arith.constant 6.000000e+00 : f32
    %9 = vector.broadcast %cst_7 : f32 to vector<16x256xf32>
    %10 = arith.maximumf %9, %8 : vector<16x256xf32>
    %11 = vector.broadcast %cst_8 : f32 to vector<16x256xf32>
    %12 = arith.minimumf %11, %10 : vector<16x256xf32>
    %13 = arith.mulf %6, %12 : vector<16x256xf32>
    %cst_9 = arith.constant 0.166666672 : f32
    %14 = vector.broadcast %cst_9 : f32 to vector<16x256xf32>
    %15 = arith.mulf %13, %14 : vector<16x256xf32>
    %16 = vector.extract_strided_slice %15 {offsets = [0, 0], sizes = [8, 256], strides = [1, 1]} : vector<16x256xf32> to vector<8x256xf32>
    %17 = vector.extract_strided_slice %15 {offsets = [8, 0], sizes = [8, 256], strides = [1, 1]} : vector<16x256xf32> to vector<8x256xf32>
    %18 = tpu.iota {dimensions = array<i32: 1>} : vector<1x256xi32>
    %c16_i32 = arith.constant 16 : i32
    %c0_i32 = arith.constant 0 : i32
    %19 = arith.cmpi eq, %c16_i32, %c0_i32 : i32
    %c1_i32 = arith.constant 1 : i32
    %20 = arith.select %19, %c1_i32, %c16_i32 : i32
    %21 = vector.broadcast %20 : i32 to vector<1x256xi32>
    %22 = arith.remsi %18, %21 : vector<1x256xi32>
    %c0_i32_10 = arith.constant 0 : i32
    %23 = vector.broadcast %c0_i32_10 : i32 to vector<1x256xi32>
    %24 = arith.cmpi ne, %22, %23 : vector<1x256xi32>
    %c0_i32_11 = arith.constant 0 : i32
    %25 = vector.broadcast %c0_i32_11 : i32 to vector<1x256xi32>
    %26 = arith.cmpi slt, %22, %25 : vector<1x256xi32>
    %c0_i32_12 = arith.constant 0 : i32
    %27 = arith.cmpi slt, %20, %c0_i32_12 : i32
    %28 = vector.broadcast %27 : i1 to vector<1x256xi1>
    %29 = vector.broadcast %28 : vector<1x256xi1> to vector<1x256xi1>
    %30 = arith.xori %26, %29 : vector<1x256xi1>
    %31 = arith.andi %30, %24 : vector<1x256xi1>
    %32 = vector.broadcast %20 : i32 to vector<1x256xi32>
    %33 = arith.addi %22, %32 : vector<1x256xi32>
    %34 = arith.select %31, %33, %22 : vector<1x256xi1>, vector<1x256xi32>
    %c1_i32_13 = arith.constant 1 : i32
    %35 = vector.broadcast %c1_i32_13 : i32 to vector<1x256xi32>
    %36 = arith.cmpi sge, %34, %35 : vector<1x256xi32>
    %c14_i32 = arith.constant 14 : i32
    %37 = vector.broadcast %c14_i32 : i32 to vector<1x256xi32>
    %38 = arith.cmpi sle, %34, %37 : vector<1x256xi32>
    %c0_14 = arith.constant 0 : index
    %c0_15 = arith.constant 0 : index
    %c0_16 = arith.constant 0 : index
    %39 = vector.load %arg4[%c0_14, %c0_15, %c0_16] : memref<1x8x8xf32, #tpu.memory_space<vmem>>, vector<1x8x8xf32>
    %40 = vector.shape_cast %39 : vector<1x8x8xf32> to vector<8x8xf32>
    %cst_17 = arith.constant dense<0.000000e+00> : vector<8x256xf32>
    %41 = tpu.matmul %40, %16, %cst_17 {dimension_numbers = #tpu.dot_dimension_numbers<[1], [0], [0], [1], [0, 0, 1, 1], [], []>} : vector<8x8xf32>, vector<8x256xf32>, vector<8x256xf32> -> vector<8x256xf32>
    %c0_18 = arith.constant 0 : index
    %c0_19 = arith.constant 0 : index
    %c0_20 = arith.constant 0 : index
    %42 = vector.load %arg5[%c0_18, %c0_19, %c0_20] : memref<1x8x1xf32, #tpu.memory_space<vmem>>, vector<1x8x1xf32>
    %43 = vector.shape_cast %42 : vector<1x8x1xf32> to vector<8x1xf32>
    %44 = vector.broadcast %43 : vector<8x1xf32> to vector<8x256xf32>
    %45 = arith.addf %41, %44 : vector<8x256xf32>
    %cst_21 = arith.constant 3.000000e+00 : f32
    %46 = vector.broadcast %cst_21 : f32 to vector<8x256xf32>
    %47 = arith.addf %45, %46 : vector<8x256xf32>
    %cst_22 = arith.constant 0.000000e+00 : f32
    %cst_23 = arith.constant 6.000000e+00 : f32
    %48 = vector.broadcast %cst_22 : f32 to vector<8x256xf32>
    %49 = arith.maximumf %48, %47 : vector<8x256xf32>
    %50 = vector.broadcast %cst_23 : f32 to vector<8x256xf32>
    %51 = arith.minimumf %50, %49 : vector<8x256xf32>
    %52 = arith.mulf %45, %51 : vector<8x256xf32>
    %cst_24 = arith.constant 0.166666672 : f32
    %53 = vector.broadcast %cst_24 : f32 to vector<8x256xf32>
    %54 = arith.mulf %52, %53 : vector<8x256xf32>
    %cst_25 = arith.constant 0.000000e+00 : f32
    %55 = vector.broadcast %cst_25 : f32 to vector<8x17xf32>
    %56 = vector.extract_strided_slice %54 {offsets = [0, 0], sizes = [8, 239], strides = [1, 1]} : vector<8x256xf32> to vector<8x239xf32>
    %57 = tpu.concatenate %55, %56 in 1 : vector<8x17xf32>, vector<8x239xf32> -> vector<8x256xf32>
    %cst_26 = arith.constant 0.000000e+00 : f32
    %58 = vector.shape_cast %36 : vector<1x256xi1> to vector<1x256xi1>
    %59 = vector.broadcast %58 : vector<1x256xi1> to vector<8x256xi1>
    %60 = vector.broadcast %cst_26 : f32 to vector<8x256xf32>
    %61 = arith.select %59, %57, %60 : vector<8x256xi1>, vector<8x256xf32>
    %cst_27 = arith.constant 0.000000e+00 : f32
    %62 = vector.broadcast %cst_27 : f32 to vector<8x16xf32>
    %63 = vector.extract_strided_slice %54 {offsets = [0, 0], sizes = [8, 240], strides = [1, 1]} : vector<8x256xf32> to vector<8x240xf32>
    %64 = tpu.concatenate %62, %63 in 1 : vector<8x16xf32>, vector<8x240xf32> -> vector<8x256xf32>
    %cst_28 = arith.constant 0.000000e+00 : f32
    %65 = vector.broadcast %cst_28 : f32 to vector<8x15xf32>
    %66 = vector.extract_strided_slice %54 {offsets = [0, 0], sizes = [8, 241], strides = [1, 1]} : vector<8x256xf32> to vector<8x241xf32>
    %67 = tpu.concatenate %65, %66 in 1 : vector<8x15xf32>, vector<8x241xf32> -> vector<8x256xf32>
    %cst_29 = arith.constant 0.000000e+00 : f32
    %68 = vector.shape_cast %38 : vector<1x256xi1> to vector<1x256xi1>
    %69 = vector.broadcast %68 : vector<1x256xi1> to vector<8x256xi1>
    %70 = vector.broadcast %cst_29 : f32 to vector<8x256xf32>
    %71 = arith.select %69, %67, %70 : vector<8x256xi1>, vector<8x256xf32>
    %cst_30 = arith.constant 0.000000e+00 : f32
    %72 = vector.broadcast %cst_30 : f32 to vector<8x1xf32>
    %73 = vector.extract_strided_slice %54 {offsets = [0, 0], sizes = [8, 255], strides = [1, 1]} : vector<8x256xf32> to vector<8x255xf32>
    %74 = tpu.concatenate %72, %73 in 1 : vector<8x1xf32>, vector<8x255xf32> -> vector<8x256xf32>
    %cst_31 = arith.constant 0.000000e+00 : f32
    %75 = vector.shape_cast %36 : vector<1x256xi1> to vector<1x256xi1>
    %76 = vector.broadcast %75 : vector<1x256xi1> to vector<8x256xi1>
    %77 = vector.broadcast %cst_31 : f32 to vector<8x256xf32>
    %78 = arith.select %76, %74, %77 : vector<8x256xi1>, vector<8x256xf32>
    %79 = vector.extract_strided_slice %54 {offsets = [0, 1], sizes = [8, 255], strides = [1, 1]} : vector<8x256xf32> to vector<8x255xf32>
    %cst_32 = arith.constant 0.000000e+00 : f32
    %80 = vector.broadcast %cst_32 : f32 to vector<8x1xf32>
    %81 = tpu.concatenate %79, %80 in 1 : vector<8x255xf32>, vector<8x1xf32> -> vector<8x256xf32>
    %cst_33 = arith.constant 0.000000e+00 : f32
    %82 = vector.shape_cast %38 : vector<1x256xi1> to vector<1x256xi1>
    %83 = vector.broadcast %82 : vector<1x256xi1> to vector<8x256xi1>
    %84 = vector.broadcast %cst_33 : f32 to vector<8x256xf32>
    %85 = arith.select %83, %81, %84 : vector<8x256xi1>, vector<8x256xf32>
    %86 = vector.extract_strided_slice %54 {offsets = [0, 15], sizes = [8, 241], strides = [1, 1]} : vector<8x256xf32> to vector<8x241xf32>
    %cst_34 = arith.constant 0.000000e+00 : f32
    %87 = vector.broadcast %cst_34 : f32 to vector<8x15xf32>
    %88 = tpu.concatenate %86, %87 in 1 : vector<8x241xf32>, vector<8x15xf32> -> vector<8x256xf32>
    %cst_35 = arith.constant 0.000000e+00 : f32
    %89 = vector.shape_cast %36 : vector<1x256xi1> to vector<1x256xi1>
    %90 = vector.broadcast %89 : vector<1x256xi1> to vector<8x256xi1>
    %91 = vector.broadcast %cst_35 : f32 to vector<8x256xf32>
    %92 = arith.select %90, %88, %91 : vector<8x256xi1>, vector<8x256xf32>
    %93 = vector.extract_strided_slice %54 {offsets = [0, 16], sizes = [8, 240], strides = [1, 1]} : vector<8x256xf32> to vector<8x240xf32>
    %cst_36 = arith.constant 0.000000e+00 : f32
    %94 = vector.broadcast %cst_36 : f32 to vector<8x16xf32>
    %95 = tpu.concatenate %93, %94 in 1 : vector<8x240xf32>, vector<8x16xf32> -> vector<8x256xf32>
    %96 = vector.extract_strided_slice %54 {offsets = [0, 17], sizes = [8, 239], strides = [1, 1]} : vector<8x256xf32> to vector<8x239xf32>
    %cst_37 = arith.constant 0.000000e+00 : f32
    %97 = vector.broadcast %cst_37 : f32 to vector<8x17xf32>
    %98 = tpu.concatenate %96, %97 in 1 : vector<8x239xf32>, vector<8x17xf32> -> vector<8x256xf32>
    %cst_38 = arith.constant 0.000000e+00 : f32
    %99 = vector.shape_cast %38 : vector<1x256xi1> to vector<1x256xi1>
    %100 = vector.broadcast %99 : vector<1x256xi1> to vector<8x256xi1>
    %101 = vector.broadcast %cst_38 : f32 to vector<8x256xf32>
    %102 = arith.select %100, %98, %101 : vector<8x256xi1>, vector<8x256xf32>
    %103 = tpu.concatenate %61, %64, %71, %78, %54, %85, %92, %95, %102 in 0 : vector<8x256xf32>, vector<8x256xf32>, vector<8x256xf32>, vector<8x256xf32>, vector<8x256xf32>, vector<8x256xf32>, vector<8x256xf32>, vector<8x256xf32>, vector<8x256xf32> -> vector<72x256xf32>
    %c0_39 = arith.constant 0 : index
    %c0_40 = arith.constant 0 : index
    %c0_41 = arith.constant 0 : index
    %104 = vector.load %arg6[%c0_39, %c0_40, %c0_41] : memref<1x8x72xf32, #tpu.memory_space<vmem>>, vector<1x8x72xf32>
    %105 = vector.shape_cast %104 : vector<1x8x72xf32> to vector<8x72xf32>
    %cst_42 = arith.constant dense<0.000000e+00> : vector<8x256xf32>
    %106 = tpu.matmul %105, %103, %cst_42 {dimension_numbers = #tpu.dot_dimension_numbers<[1], [0], [0], [1], [0, 0, 1, 1], [], []>} : vector<8x72xf32>, vector<72x256xf32>, vector<8x256xf32> -> vector<8x256xf32>
    %c0_43 = arith.constant 0 : index
    %c0_44 = arith.constant 0 : index
    %c0_45 = arith.constant 0 : index
    %107 = vector.load %arg7[%c0_43, %c0_44, %c0_45] : memref<1x8x1xf32, #tpu.memory_space<vmem>>, vector<1x8x1xf32>
    %108 = vector.shape_cast %107 : vector<1x8x1xf32> to vector<8x1xf32>
    %109 = vector.broadcast %108 : vector<8x1xf32> to vector<8x256xf32>
    %110 = arith.addf %106, %109 : vector<8x256xf32>
    %cst_46 = arith.constant 3.000000e+00 : f32
    %111 = vector.broadcast %cst_46 : f32 to vector<8x256xf32>
    %112 = arith.addf %110, %111 : vector<8x256xf32>
    %cst_47 = arith.constant 0.000000e+00 : f32
    %cst_48 = arith.constant 6.000000e+00 : f32
    %113 = vector.broadcast %cst_47 : f32 to vector<8x256xf32>
    %114 = arith.maximumf %113, %112 : vector<8x256xf32>
    %115 = vector.broadcast %cst_48 : f32 to vector<8x256xf32>
    %116 = arith.minimumf %115, %114 : vector<8x256xf32>
    %117 = arith.mulf %110, %116 : vector<8x256xf32>
    %cst_49 = arith.constant 0.166666672 : f32
    %118 = vector.broadcast %cst_49 : f32 to vector<8x256xf32>
    %119 = arith.mulf %117, %118 : vector<8x256xf32>
    %120 = arith.addf %16, %119 : vector<8x256xf32>
    %c0_50 = arith.constant 0 : index
    %c0_51 = arith.constant 0 : index
    %121 = vector.load %arg8[%c0_50, %c0_51] : memref<16x8xf32, #tpu.memory_space<vmem>>, vector<16x8xf32>
    %cst_52 = arith.constant dense<0.000000e+00> : vector<16x256xf32>
    %122 = tpu.matmul %121, %120, %cst_52 {dimension_numbers = #tpu.dot_dimension_numbers<[1], [0], [0], [1], [0, 0, 1, 1], [], []>} : vector<16x8xf32>, vector<8x256xf32>, vector<16x256xf32> -> vector<16x256xf32>
    %c0_53 = arith.constant 0 : index
    %c0_54 = arith.constant 0 : index
    %123 = vector.load %arg9[%c0_53, %c0_54] : memref<16x8xf32, #tpu.memory_space<vmem>>, vector<16x8xf32>
    %cst_55 = arith.constant dense<0.000000e+00> : vector<16x256xf32>
    %124 = tpu.matmul %123, %17, %cst_55 {dimension_numbers = #tpu.dot_dimension_numbers<[1], [0], [0], [1], [0, 0, 1, 1], [], []>} : vector<16x8xf32>, vector<8x256xf32>, vector<16x256xf32> -> vector<16x256xf32>
    %125 = arith.addf %122, %124 : vector<16x256xf32>
    %c0_56 = arith.constant 0 : index
    %c0_57 = arith.constant 0 : index
    %126 = vector.load %arg10[%c0_56, %c0_57] : memref<16x1xf32, #tpu.memory_space<vmem>>, vector<16x1xf32>
    %127 = vector.broadcast %126 : vector<16x1xf32> to vector<16x256xf32>
    %128 = arith.addf %125, %127 : vector<16x256xf32>
    %cst_58 = arith.constant 3.000000e+00 : f32
    %129 = vector.broadcast %cst_58 : f32 to vector<16x256xf32>
    %130 = arith.addf %128, %129 : vector<16x256xf32>
    %cst_59 = arith.constant 0.000000e+00 : f32
    %cst_60 = arith.constant 6.000000e+00 : f32
    %131 = vector.broadcast %cst_59 : f32 to vector<16x256xf32>
    %132 = arith.maximumf %131, %130 : vector<16x256xf32>
    %133 = vector.broadcast %cst_60 : f32 to vector<16x256xf32>
    %134 = arith.minimumf %133, %132 : vector<16x256xf32>
    %135 = arith.mulf %128, %134 : vector<16x256xf32>
    %cst_61 = arith.constant 0.166666672 : f32
    %136 = vector.broadcast %cst_61 : f32 to vector<16x256xf32>
    %137 = arith.mulf %135, %136 : vector<16x256xf32>
    %c0_62 = arith.constant 0 : index
    %c0_63 = arith.constant 0 : index
    %c0_64 = arith.constant 0 : index
    %138 = vector.load %arg11[%c0_62, %c0_63, %c0_64] : memref<1x16x256xf32, #tpu.memory_space<vmem>>, vector<1x16x256xf32>
    %139 = vector.shape_cast %138 : vector<1x16x256xf32> to vector<16x256xf32>
    %140 = vector.shape_cast %137 : vector<16x256xf32> to vector<1x16x256xf32>
    tpu.vector_store %arg11[%c0_62, %c0_63, %c0_64], %140 {strides = array<i32>} : memref<1x16x256xf32, #tpu.memory_space<vmem>>, vector<1x16x256xf32>,
    return
  }
  func.func @transform_0(%arg0: i32) -> (i32, i32, i32) {
    %c0_i32 = arith.constant 0 : i32
    %c0_i32_0 = arith.constant 0 : i32
    %c0_i32_1 = arith.constant 0 : i32
    return %arg0, %c0_i32, %c0_i32_0 : i32, i32, i32
  }
  func.func @transform_1(%arg0: i32) -> (i32, i32) {
    %c0_i32 = arith.constant 0 : i32
    %c0_i32_0 = arith.constant 0 : i32
    %c0_i32_1 = arith.constant 0 : i32
    return %c0_i32, %c0_i32_0 : i32, i32
  }
  func.func @transform_2(%arg0: i32) -> (i32, i32) {
    %c0_i32 = arith.constant 0 : i32
    %c0_i32_0 = arith.constant 0 : i32
    %c0_i32_1 = arith.constant 0 : i32
    return %c0_i32, %c0_i32_0 : i32, i32
  }
  func.func @transform_3(%arg0: i32) -> (i32, i32, i32) {
    %c0_i32 = arith.constant 0 : i32
    %c0_i32_0 = arith.constant 0 : i32
    %c0_i32_1 = arith.constant 0 : i32
    %c0_i32_2 = arith.constant 0 : i32
    return %c0_i32, %c0_i32_0, %c0_i32_1 : i32, i32, i32
  }
  func.func @transform_4(%arg0: i32) -> (i32, i32, i32) {
    %c0_i32 = arith.constant 0 : i32
    %c0_i32_0 = arith.constant 0 : i32
    %c0_i32_1 = arith.constant 0 : i32
    %c0_i32_2 = arith.constant 0 : i32
    return %c0_i32, %c0_i32_0, %c0_i32_1 : i32, i32, i32
  }
  func.func @transform_5(%arg0: i32) -> (i32, i32, i32) {
    %c0_i32 = arith.constant 0 : i32
    %c0_i32_0 = arith.constant 0 : i32
    %c0_i32_1 = arith.constant 0 : i32
    %c0_i32_2 = arith.constant 0 : i32
    return %c0_i32, %c0_i32_0, %c0_i32_1 : i32, i32, i32
  }
  func.func @transform_6(%arg0: i32) -> (i32, i32, i32) {
    %c0_i32 = arith.constant 0 : i32
    %c0_i32_0 = arith.constant 0 : i32
    %c0_i32_1 = arith.constant 0 : i32
    %c0_i32_2 = arith.constant 0 : i32
    return %c0_i32, %c0_i32_0, %c0_i32_1 : i32, i32, i32
  }
  func.func @transform_7(%arg0: i32) -> (i32, i32) {
    %c0_i32 = arith.constant 0 : i32
    %c0_i32_0 = arith.constant 0 : i32
    %c0_i32_1 = arith.constant 0 : i32
    return %c0_i32, %c0_i32_0 : i32, i32
  }
  func.func @transform_8(%arg0: i32) -> (i32, i32) {
    %c0_i32 = arith.constant 0 : i32
    %c0_i32_0 = arith.constant 0 : i32
    %c0_i32_1 = arith.constant 0 : i32
    return %c0_i32, %c0_i32_0 : i32, i32
  }
  func.func @transform_9(%arg0: i32) -> (i32, i32) {
    %c0_i32 = arith.constant 0 : i32
    %c0_i32_0 = arith.constant 0 : i32
    %c0_i32_1 = arith.constant 0 : i32
    return %c0_i32, %c0_i32_0 : i32, i32
  }
  func.func @transform_10(%arg0: i32) -> (i32, i32, i32) {
    %c0_i32 = arith.constant 0 : i32
    %c0_i32_0 = arith.constant 0 : i32
    %c0_i32_1 = arith.constant 0 : i32
    return %arg0, %c0_i32, %c0_i32_0 : i32, i32, i32
  }
}

</mosaic_0001>

<bundles_post_ra>
// kernel: c3_forward.1
= control target key start
LH: loop header
LB: loop body
LE: loop exit
PB: predicated region body
PF: predicated region fallthrough
CT: control target
= control target key end

     0   :  { %s1186_s13 = smov 0   ;;  %s1339_s0 = inlined_call_operand.vmem [shape: f32[2,16,256], index: 0, kind: input, shape index: {}]   ;;  %s1340_s1 = inlined_call_operand.vmem [shape: f32[16,16], index: 1, kind: input, shape index: {}]   ;;  %s1341_s2 = inlined_call_operand.vmem [shape: f32[16,1], index: 2, kind: input, shape index: {}]   ;;  %s1342_s3 = inlined_call_operand.vmem [shape: f32[1,8,8], index: 3, kind: input, shape index: {}]   ;;  %s1343_s4 = inlined_call_operand.vmem [shape: f32[1,8,1], index: 4, kind: input, shape index: {}]   ;;  %s1344_s5 = inlined_call_operand.vmem [shape: f32[1,8,72], index: 5, kind: input, shape index: {}]   ;;  %s1345_s6 = inlined_call_operand.vmem [shape: f32[1,8,1], index: 6, kind: input, shape index: {}]   ;;  %s1346_s7 = inlined_call_operand.vmem [shape: f32[16,8], index: 7, kind: input, shape index: {}]   ;;  %s1347_s8 = inlined_call_operand.vmem [shape: f32[16,8], index: 8, kind: input, shape index: {}]   ;;  %s1348_s9 = inlined_call_operand.vmem [shape: f32[16,1], index: 9, kind: input, shape index: {}]   ;;  %s1349_s10 = inlined_call_operand.vmem [shape: f32[2,16,256], index: 10, kind: output, shape index: {}]  }
   0x1 LB: > { %s1057_s14 = sadd.s32 4294967295, %s1119_s13   ;;  %p1061_p0 = scmp.ge.s32.totalorder %s1119_s13, 1  ;;  %s1119_s13 = sphi %s1186_s13, %s20_s13  }
   0x2   : > { %p312_p1 = scmp.lt.s32.totalorder %s1119_s13, 3 }
   0x4   : > { %p313_p2 = pnand %p1061_p0, %p312_p1 }
   0x5   : > { %p350_p3 = scmp.lt.s32.totalorder (!%p313_p2), %s1057_s14, 1  ;;  %s1123_s29 = smov (!%p313_p2), 112  }
   0x6   : > { %316 = sbr.rel (%p313_p2) target bundleno = 1008 (0x3f0), region = 60  ;;  %s1124_s30 = smov (!%p313_p2), 111  }
   0x7   : > { %s1125_s11 = smov (!%p313_p2), 1   ;;  %s1126_s12 = smov (!%p313_p2), 113  }
   0x8   : > { %s1127_s15 = smov (!%p313_p2), 127   ;;  %s1128_s16 = smov (!%p313_p2), 15  }
   0x9   : > { %s1129_s17 = smov (!%p313_p2), 16   ;;  %s1130_s18 = smov (!%p313_p2), 17  }
   0xb   : > { %v366_v0 = vld [vmem:[%s1341_s2] sm:$0xff]  ;;  %v1121_v1 = vmov 0.0   ;;  %v1122_v2 = vmov 0   ;;  %s1359_s14 = smov (!%p350_p3, %s1057_s14), 1  ;;  %vm378_vm0 = vcmask 130048   ;;  %v365_v9 = vld [vmem:[%s1340_s1 + $0x8] sm:$0xff]  ;;  %v482_v45 = vlaneseq }
   0xc   : > { %449 = vmatprep.mubr.f32.mxu0 %v1121_v1  ;;  %1111 = vset.pattern.permute.xlu0 %v1122_v2  ;;  %v514_v3 = vld [vmem:[%s1343_s4] sm:$0xff]  ;;  %s1091_s19 = sshll.u32 %s1359_s14, 5  ;;  %vm520_vm1 = vcmask 64512   ;;  %v367_v41 = vld [vmem:[%s1341_s2 + $0x8] sm:$0xff]  ;;  %vm691_vm2 = vcmask 908288   ;;  %vm682_vm5 = vcmask 916480   ;;  %vm1080_vm12 = vmneg %vm378_vm0 }
   0xd   : > { %370 = vperm.xlu0 %1111, %v366_v0   ;;  %588 = vmatprep.mubr.f32.mxu1 %v1121_v1  ;;  %s354_s22 = scalar_lea.vmem %s1339_s0, %s1091_s19  ;;  %v364_v8 = vld [vmem:[%s1340_s1] sm:$0xff]  ;;  %v963_v44 = vld [vmem:[%s1348_s9 + $0x8] sm:$0xff]  ;;  %v483_v46 = vand.u32 127, %v482_v45  ;;  %vm671_vm6 = vcmask 924672   ;;  %vm660_vm8 = vcmask 1039360   ;;  %vm649_vm10 = vcmask 7168   ;;  %s359_s23 = scalar_lea.vmem %s1349_s10, %s1091_s19 }
   0xe   : > { %1112 = vset.pattern.permute.xlu1 %v1122_v2  ;;  %v363_v4 = vld [vmem:[%s354_s22 + $0x18] sm:$0xff]  ;;  %v362_v5 = vld [vmem:[%s354_s22 + $0x10] sm:$0xff]  ;;  %v361_v6 = vld [vmem:[%s354_s22 + $0x8] sm:$0xff]  ;;  %vm634_vm11 = vcmask 121856   ;;  %vm611_vm13 = vcmask 138240   ;;  %vm705_vm14 = vcmask 588800  }
   0xf   : > { %413 = vmatprep.subr.mxu0 %v363_v4  ;;  %v360_v7 = vld [vmem:[%s354_s22] sm:$0xff]  ;;  %v484_v49 = vadd.s32 128, %v483_v46  ;;  %v489_v55 = vand.u32 15, %v483_v46 }
  0x10   : > { %414 = vmatpush1.msra.mxu0 %v362_v5  ;;  %v513_v25 = vld [vmem:[%s1342_s3] sm:$0xff] }
  0x11   : > { %517 = vperm.xlu0 %1111, %v514_v3   ;;  %415 = vmatprep.subr.mxu0 %v361_v6  ;;  %v962_v42 = vld [vmem:[%s1348_s9] sm:$0xff]  ;;  %v496_v52 = vand.u32 15, %v484_v49  ;;  %vm1267_vm4 = vcmp.le.s32.totalorder %v489_v55, 14  ;;  %vm1279_vm9 = vcmp.ge.s32.totalorder %v489_v55, 1 }
  0x12   : > { %416 = vmatpush1.msra.mxu0 %v360_v7  ;;  %v699_v43 = vld [vmem:[%s1345_s6] sm:$0xff] }
  0x13   : > { %1066 = vmatmul.mubr.msk.f32.vlgmr.msra.gmra.mxu0 %vm378_vm0, %v364_v8  ;;  %vm1263_vm3 = vcmp.le.s32.totalorder %v496_v52, 14  ;;  %vm1275_vm7 = vcmp.ge.s32.totalorder %v496_v52, 1  ;;  %v792_v58 = vld [vmem:[%s1346_s7] sm:$0xff] }
  0x14   : > { %455 = vmatprep.mubr.f32.mxu0 %v1121_v1 }
  0x17   : > { %1067 = vmatmul.mubr.msk.f32.gmra.mxu0 %vm378_vm0, %v365_v9 }
  0x18   : > { %866 = vmatprep.mubr.f32.mxu0 %v1121_v1 }
  0x88   : > { %v371_v10 = vpop.permute.xlu0 %370 }
  0x8c   : > { %v518_v26 = vpop.permute.xlu0 %517 }
  0xd3   : > { %v451_v11 = vpop.f32.mrf.mxu0 }
  0xd4   : > { %v452_v12 = vadd.f32 %v451_v11, %v371_v10 }
  0xd5   : > { %v453_v13 = vpop.f32.mrf.mxu0 }
  0xd6   : > { %v462_v14 = vadd.f32 3.0, %v452_v12  ;;  %v454_v15 = vadd.f32 %v453_v13, %v371_v10 }
  0xd8   : > { %v466_v16 = vmax.f32 %v462_v14, 0.0  ;;  %v463_v17 = vadd.f32 3.0, %v454_v15 }
  0xda   : > { %v470_v18 = vmin.f32 %v466_v16, 6.0  ;;  %v467_v19 = vmax.f32 %v463_v17, 0.0 }
  0xdc   : > { %v471_v20 = vmin.f32 %v467_v19, 6.0  ;;  %v474_v21 = vmul.f32 %v470_v18, %v452_v12  ;;  %v457_v18 = vpop.f32.mrf.mxu0 }
  0xde   : > { %v475_v22 = vmul.f32 %v471_v20, %v454_v15  ;;  %v1222_v24 = vmul.f32 0.16666667, %v474_v21  ;;  %v698_v21 = vld [vmem:[%s1344_s5] sm:$0xff] }
  0xe0   : > { %v1220_v23 = vmul.f32 0.16666667, %v475_v22 }
  0xe2   : > { %554 = vmatprep.subr.mxu1 %v1220_v23 }
  0xe3   : > { %555 = vmatpush1.msra.mxu1 %v1222_v24 }
  0xe4   : > { %1068 = vmatmul.mubr.msk.f32.vlgmr.msra.gmra.mxu1 %vm520_vm1, %v513_v25  ;;  %v459_v25 = vpop.f32.mrf.mxu0 }
  0xe5   : > { %773 = vmatprep.mubr.f32.mxu1 %v1121_v1 }
 0x1a4   : > { %v590_v27 = vpop.f32.mrf.mxu1 }
 0x1a5   : > { %v591_v28 = vadd.f32 %v590_v27, %v518_v26 }
 0x1a6   : > { %v592_v29 = vpop.f32.mrf.mxu1 }
 0x1a7   : > { %v595_v30 = vadd.f32 3.0, %v591_v28  ;;  %v593_v31 = vadd.f32 %v592_v29, %v518_v26 }
 0x1a9   : > { %v597_v32 = vmax.f32 %v595_v30, 0.0  ;;  %v596_v33 = vadd.f32 3.0, %v593_v31 }
 0x1ab   : > { %v599_v34 = vmin.f32 %v597_v32, 6.0  ;;  %v598_v35 = vmax.f32 %v596_v33, 0.0 }
 0x1ad   : > { %v601_v36 = vmul.f32 %v599_v34, %v591_v28  ;;  %v600_v38 = vmin.f32 %v598_v35, 6.0 }
 0x1af   : > { %v1231_v37 = vmul.f32 0.16666667, %v601_v36  ;;  %v602_v39 = vmul.f32 %v600_v38, %v593_v31 }
 0x1b1   : > { %678 = vrot.lane.b32.xlu0 %v1231_v37, %s1123_s29  ;;  %687 = vrot.lane.b32.xlu1 %v1231_v37, %s1124_s30  ;;  %v1237_v40 = vmul.f32 0.16666667, %v602_v39  ;;  %v794_v39 = vld [vmem:[%s1347_s8] sm:$0xff] }
 0x1b5   : > { %645 = vrot.lane.b32.xlu0 %v1231_v37, %s1125_s11  ;;  %667 = vrot.lane.b32.xlu1 %v1231_v37, %s1126_s12 }
 0x1b9   : > { %669 = vrot.lane.b32.xlu0 %v1237_v40, %s1126_s12  ;;  %656 = vrot.lane.b32.xlu1 %v1231_v37, %s1127_s15 }
 0x1bd   : > { %658 = vrot.lane.b32.xlu0 %v1237_v40, %s1127_s15  ;;  %689 = vrot.lane.b32.xlu1 %v1237_v40, %s1124_s30 }
 0x1c1   : > { %630 = vrot.lane.b32.xlu0 %v1231_v37, %s1128_s16  ;;  %680 = vrot.lane.b32.xlu1 %v1237_v40, %s1123_s29 }
 0x1c5   : > { %622 = vrot.lane.b32.xlu0 %v1231_v37, %s1129_s17  ;;  %647 = vrot.lane.b32.xlu1 %v1237_v40, %s1125_s11 }
 0x1c9   : > { %607 = vrot.lane.b32.xlu0 %v1231_v37, %s1130_s18  ;;  %632 = vrot.lane.b32.xlu1 %v1237_v40, %s1128_s16 }
 0x1cd   : > { %375 = vperm.xlu0 %1111, %v367_v41   ;;  %624 = vrot.lane.b32.xlu1 %v1237_v40, %s1129_s17 }
 0x1d1   : > { %966 = vperm.xlu0 %1111, %v962_v42   ;;  %609 = vrot.lane.b32.xlu1 %v1237_v40, %s1130_s18 }
 0x1d5   : > { %702 = vperm.xlu1 %1112, %v699_v43  }
 0x1d9   : > { %971 = vperm.xlu1 %1112, %v963_v44  }
 0x223   : > { %v679_v47 = vpop.permute.xlu0 %678  ;;  %v688_v48 = vpop.permute.xlu1 %687 }
 0x227   : > { %v646_v50 = vpop.permute.xlu0 %645  ;;  %v668_v51 = vpop.permute.xlu1 %667 }
 0x228   : > { %v653_v11 = vsel %vm649_vm10, 0.0, %v646_v50 }
 0x22b   : > { %v670_v53 = vpop.permute.xlu0 %669  ;;  %v657_v54 = vpop.permute.xlu1 %656 }
 0x22c   : > { %v675_v3 = vsel %vm671_vm6, %v670_v53, 0.0  ;;  %v672_v4 = vsel %vm671_vm6, %v668_v51, %v670_v53 }
 0x22f   : > { %v690_v57 = vpop.permute.xlu1 %689  ;;  %v659_v59 = vpop.permute.xlu0 %658 }
 0x230   : > { %v692_v60 = vsel %vm691_vm2, %v688_v48, %v690_v57  ;;  %v695_v61 = vsel %vm691_vm2, %v690_v57, 0.0  ;;  %v664_v6 = vsel %vm660_vm8, %v659_v59, 0.0  ;;  %v661_v8 = vsel %vm660_vm8, %v657_v54, %v659_v59  ;;  %v793_v59 = vld [vmem:[%s1346_s7 + $0x8] sm:$0xff] }
 0x231   : > { %1069 = vmatprep.subr.msk.mxu1 %vm1263_vm3, %v695_v61 }
 0x232   : > { %1070 = vmatpush1.msk.msra.mxu1 %vm1267_vm4, %v692_v60 }
 0x233   : > { %v681_v62 = vpop.permute.xlu1 %680  ;;  %v631_v5 = vpop.permute.xlu0 %630 }
 0x234   : > { %v683_v0 = vsel %vm682_vm5, %v679_v47, %v681_v62  ;;  %1071 = vmatprep.subr.msk.mxu1 %vm682_vm5, %v681_v62  ;;  %v638_v14 = vsel %vm634_vm11, 0.0, %v631_v5 }
 0x235   : > { %726 = vmatpush1.msra.mxu1 %v683_v0 }
 0x236   : > { %1072 = vmatprep.subr.msk.mxu1 %vm1275_vm7, %v675_v3 }
 0x237   : > { %1073 = vmatpush1.msk.msra.mxu1 %vm1279_vm9, %v672_v4  ;;  %v648_v7 = vpop.permute.xlu1 %647  ;;  %v623_v12 = vpop.permute.xlu0 %622 }
 0x238   : > { %1074 = vmatprep.subr.msk.mxu1 %vm1263_vm3, %v664_v6  ;;  %v650_v9 = vsel %vm649_vm10, %v646_v50, %v648_v7 }
 0x239   : > { %1075 = vmatpush1.msk.msra.mxu1 %vm1267_vm4, %v661_v8 }
 0x23a   : > { %731 = vmatprep.subr.mxu1 %v1237_v40  ;;  %v795_v40 = vld [vmem:[%s1347_s8 + $0x8] sm:$0xff] }
 0x23b   : > { %732 = vmatpush1.msra.mxu1 %v1231_v37  ;;  %v633_v10 = vpop.permute.xlu1 %632  ;;  %v608_v17 = vpop.permute.xlu0 %607 }
 0x23c   : > { %v635_v13 = vsel %vm634_vm11, %v631_v5, %v633_v10  ;;  %1076 = vmatprep.subr.msk.mxu1 %vm1275_vm7, %v650_v9  ;;  %v615_v22 = vsel %vm611_vm13, 0.0, %v608_v17 }
 0x23d   : > { %1077 = vmatpush1.msk.msra.mxu1 %vm1279_vm9, %v653_v11 }
 0x23e   : > { %1078 = vmatprep.subr.msk.mxu1 %vm1263_vm3, %v635_v13 }
 0x23f   : > { %1079 = vmatpush1.msk.msra.mxu1 %vm1267_vm4, %v638_v14  ;;  %v625_v15 = vpop.permute.xlu1 %624 }
 0x240   : > { %v626_v16 = vsel %vm378_vm0, %v623_v12, %v625_v15 }
 0x241   : > { %737 = vmatprep.subr.mxu1 %v626_v16 }
 0x242   : > { %1081 = vmatpush1.msk.msra.mxu1 %vm1080_vm12, %v623_v12 }
 0x243   : > { %v610_v19 = vpop.permute.xlu1 %609 }
 0x244   : > { %v612_v20 = vsel %vm611_vm13, %v608_v17, %v610_v19 }
 0x245   : > { %1082 = vmatprep.subr.msk.mxu1 %vm1275_vm7, %v612_v20 }
 0x246   : > { %1083 = vmatpush1.msk.msra.mxu1 %vm1279_vm9, %v615_v22 }
 0x247   : > { %1084 = vmatmul.mubr.msk.f32.vlgmr.msra.gmra.mxu1 %vm705_vm14, %v698_v21 }
 0x248   : > { %v376_v26 = vpop.permute.xlu0 %375 }
 0x249   : > { %v458_v27 = vadd.f32 %v457_v18, %v376_v26  ;;  %v460_v28 = vadd.f32 %v459_v25, %v376_v26 }
 0x24b   : > { %v464_v29 = vadd.f32 3.0, %v458_v27  ;;  %v465_v30 = vadd.f32 3.0, %v460_v28 }
 0x24c   : > { %v967_v0 = vpop.permute.xlu0 %966 }
 0x24d   : > { %v468_v31 = vmax.f32 %v464_v29, 0.0  ;;  %v469_v32 = vmax.f32 %v465_v30, 0.0 }
 0x24f   : > { %v472_v33 = vmin.f32 %v468_v31, 6.0  ;;  %v473_v34 = vmin.f32 %v469_v32, 6.0 }
 0x250   : > { %v703_v41 = vpop.permute.xlu1 %702 }
 0x251   : > { %v476_v35 = vmul.f32 %v472_v33, %v458_v27  ;;  %v477_v36 = vmul.f32 %v473_v34, %v460_v28 }
 0x253   : > { %v480_v37 = vmul.f32 0.16666667, %v476_v35  ;;  %v481_v38 = vmul.f32 0.16666667, %v477_v36 }
 0x254   : > { %v972_v8 = vpop.permute.xlu1 %971 }
 0x255   : > { %832 = vmatprep.subr.mxu0 %v481_v38 }
 0x256   : > { %833 = vmatpush1.msra.mxu0 %v480_v37 }
 0x257   : > { %1085 = vmatmul.mubr.msk.f32.vlgmr.msra.gmra.mxu0 %vm520_vm1, %v794_v39 }
 0x258   : > { %872 = vmatprep.mubr.f32.mxu0 %v1121_v1 }
 0x25b   : > { %1086 = vmatmul.mubr.msk.f32.gmra.mxu0 %vm520_vm1, %v795_v40 }
 0x25c   : > { %949 = vmatprep.mubr.f32.mxu0 %v1121_v1 }
 0x307   : > { %v775_v42 = vpop.f32.mrf.mxu1 }
 0x308   : > { %v776_v43 = vadd.f32 %v775_v42, %v703_v41 }
 0x309   : > { %v777_v44 = vpop.f32.mrf.mxu1 }
 0x30a   : > { %v780_v45 = vadd.f32 3.0, %v776_v43  ;;  %v778_v46 = vadd.f32 %v777_v44, %v703_v41 }
 0x30c   : > { %v782_v47 = vmax.f32 %v780_v45, 0.0  ;;  %v781_v48 = vadd.f32 3.0, %v778_v46 }
 0x30e   : > { %v784_v49 = vmin.f32 %v782_v47, 6.0  ;;  %v783_v50 = vmax.f32 %v781_v48, 0.0 }
 0x310   : > { %v786_v51 = vmul.f32 %v784_v49, %v776_v43  ;;  %v785_v52 = vmin.f32 %v783_v50, 6.0 }
 0x312   : > { %v787_v53 = vmul.f32 %v785_v52, %v778_v46  ;;  %v788_v54 = vmul.f32 0.16666667, %v786_v51 }
 0x314   : > { %v789_v55 = vmul.f32 0.16666667, %v787_v53  ;;  %v790_v57 = vadd.f32 %v788_v54, %v1222_v24 }
 0x316   : > { %v791_v56 = vadd.f32 %v789_v55, %v1220_v23 }
 0x317   : > { %v868_v60 = vpop.f32.mrf.mxu0 }
 0x318   : > { %915 = vmatprep.subr.mxu0 %v791_v56 }
 0x319   : > { %916 = vmatpush1.msra.mxu0 %v790_v57  ;;  %v870_v23 = vpop.f32.mrf.mxu0 }
 0x31a   : > { %1087 = vmatmul.mubr.msk.f32.vlgmr.msra.gmra.mxu0 %vm520_vm1, %v792_v58 }
 0x31b   : > { %955 = vmatprep.mubr.f32.mxu0 %v1121_v1  ;;  %v874_v61 = vpop.f32.mrf.mxu0 }
 0x31d   : > { %v876_v24 = vpop.f32.mrf.mxu0 }
 0x31e   : > { %1088 = vmatmul.mubr.msk.f32.gmra.mxu0 %vm520_vm1, %v793_v59 }
 0x3da   : > { %v951_v62 = vpop.f32.mrf.mxu0 }
 0x3db   : > { %v952_v63 = vadd.f32 %v951_v62, %v868_v60 }
 0x3dc   : > { %v953_v2 = vpop.f32.mrf.mxu0 }
 0x3dd   : > { %v974_v3 = vadd.f32 %v967_v0, %v952_v63  ;;  %v954_v4 = vadd.f32 %v953_v2, %v870_v23 }
 0x3de   : > { %v957_v5 = vpop.f32.mrf.mxu0 }
 0x3df   : > { %v978_v6 = vadd.f32 3.0, %v974_v3  ;;  %v975_v7 = vadd.f32 %v967_v0, %v954_v4  ;;  %v958_v1 = vadd.f32 %v957_v5, %v874_v61 }
 0x3e0   : > { %v959_v9 = vpop.f32.mrf.mxu0 }
 0x3e1   : > { %v982_v10 = vmax.f32 %v978_v6, 0.0  ;;  %v979_v11 = vadd.f32 3.0, %v975_v7  ;;  %v976_v12 = vadd.f32 %v972_v8, %v958_v1  ;;  %v960_v13 = vadd.f32 %v959_v9, %v876_v24 }
 0x3e3   : > { %v986_v14 = vmin.f32 %v982_v10, 6.0  ;;  %v983_v15 = vmax.f32 %v979_v11, 0.0  ;;  %v980_v16 = vadd.f32 3.0, %v976_v12  ;;  %v977_v17 = vadd.f32 %v972_v8, %v960_v13 }
 0x3e5   : > { %v990_v18 = vmul.f32 %v986_v14, %v974_v3  ;;  %v987_v19 = vmin.f32 %v983_v15, 6.0  ;;  %v984_v20 = vmax.f32 %v980_v16, 0.0  ;;  %v981_v21 = vadd.f32 3.0, %v977_v17 }
 0x3e7   : > { %v994_v22 = vmul.f32 0.16666667, %v990_v18  ;;  %v991_v25 = vmul.f32 %v987_v19, %v975_v7  ;;  %v988_v26 = vmin.f32 %v984_v20, 6.0  ;;  %v985_v27 = vmax.f32 %v981_v21, 0.0 }
 0x3e9   : > { %998 = vst [vmem:[%s359_s23] sm:$0xff] %v994_v22  ;;  %v995_v28 = vmul.f32 0.16666667, %v991_v25  ;;  %v992_v29 = vmul.f32 %v988_v26, %v976_v12  ;;  %v989_v30 = vmin.f32 %v985_v27, 6.0 }
 0x3eb   : > { %999 = vst [vmem:[%s359_s23 + $0x8] sm:$0xff] %v995_v28  ;;  %v996_v31 = vmul.f32 0.16666667, %v992_v29  ;;  %v993_v32 = vmul.f32 %v989_v30, %v977_v17 }
 0x3ed   : > { %1000 = vst [vmem:[%s359_s23 + $0x10] sm:$0xff] %v996_v31  ;;  %v997_v33 = vmul.f32 0.16666667, %v993_v32 }
 0x3ef   : > { %1001 = vst [vmem:[%s359_s23 + $0x18] sm:$0xff] %v997_v33 }
 0x3f0 PF: > { %s20_s13 = sadd.s32 1, %s1119_s13  }
 0x3f1   : > { %p17_p4 = scmp.ge.s32.totalorder %s20_s13, 4  }
 0x3f3   :  { %19 = sbr.rel (!%p17_p4) target bundleno = 1 (0x1), region = 90 }

</bundles_post_ra>
